<compile_context>
chip_gen: v5e
topology: v5e:2x2
jax: 0.10.0
libtpu: 0.0.40
codegen_flags: <defaults>
</compile_context>

<pallas_src>
import jax
import jax.numpy as jnp
from jax.experimental import pallas as pl
from jax.experimental.pallas import tpu as pltpu


# ---------------------------------------------------------------------------
# ConvTranspose2d(C, C, kernel=(2,2), stride=2) kernel
# ---------------------------------------------------------------------------
def _conv_transpose_2x2_kernel(x_ref, w_ref, b_ref, o_ref):
    # x_ref: (TH, Wi, Cin)
    # w_ref: (2, Cin, 2*Cout)   -- leading dim is dy, columns ordered [dx, cout]
    # b_ref: (2, 1, 2*Cout)
    # o_ref: (TH, 2, Wi, 2*Cout) blocked output; (i, dy, j, dx*Cout+co) maps to
    #        output pixel (2i+dy, 2j+dx, co) after a free reshape in the wrapper.
    TH, Wi, Cin = x_ref.shape
    c2 = o_ref.shape[-1]
    x2 = x_ref[...].reshape(TH * Wi, Cin)
    y0 = jnp.dot(x2, w_ref[0], preferred_element_type=jnp.float32) + b_ref[0]
    y1 = jnp.dot(x2, w_ref[1], preferred_element_type=jnp.float32) + b_ref[1]
    o_ref[:, 0:1, :, :] = y0.reshape(TH, 1, Wi, c2).astype(o_ref.dtype)
    o_ref[:, 1:2, :, :] = y1.reshape(TH, 1, Wi, c2).astype(o_ref.dtype)


def conv_transpose_2x2(x_nhwc, w_dy, b_dy, *, tile_h=8):
    N, Hi, Wi, Cin = x_nhwc.shape
    cout = w_dy.shape[-1] // 2
    TH = tile_h if Hi % tile_h == 0 else Hi
    n_h = Hi // TH
    y = pl.pallas_call(
        _conv_transpose_2x2_kernel,
        out_shape=jax.ShapeDtypeStruct((N, Hi, 2, Wi, 2 * cout), x_nhwc.dtype),
        grid=(N, n_h),
        in_specs=[
            pl.BlockSpec((None, TH, Wi, Cin), lambda n, h: (n, h, 0, 0)),
            pl.BlockSpec((2, Cin, 2 * cout), lambda n, h: (0, 0, 0)),
            pl.BlockSpec((2, 1, 2 * cout), lambda n, h: (0, 0, 0)),
        ],
        out_specs=pl.BlockSpec((None, TH, 2, Wi, 2 * cout),
                               lambda n, h: (n, h, 0, 0, 0)),
        compiler_params=pltpu.CompilerParams(
            dimension_semantics=("parallel", "parallel")),
    )(x_nhwc, w_dy, b_dy)
    # Blocked (N, Hi, 2, Wi, 2*Cout) -> (N, 2*Hi, 2*Wi, Cout): free reshape.
    return y.reshape(N, 2 * Hi, 2 * Wi, cout)


# ---------------------------------------------------------------------------
# Conv3x3(pad=1) + folded BatchNorm + ReLU kernel (H-tiled, halo via DMA)
# ---------------------------------------------------------------------------
def _make_conv_kernel(n_in, TH, W, n_h, cins, buf_dtype, compute_dtype):
    def kernel(*args):
        x_hbm = args[:n_in]                         # full arrays in HBM (pl.ANY)
        w_refs = args[n_in:2 * n_in]                # (9*Cin_i, Cout) each
        scale_ref = args[2 * n_in]                  # (1, Cout) folded BN scale
        bias_ref = args[2 * n_in + 1]               # (1, Cout) folded BN bias
        o_ref = args[2 * n_in + 2]                  # (TH, W, Cout)
        bufs = args[2 * n_in + 3:2 * n_in + 3 + n_in]   # VMEM (TH+2, W, Cin_i)
        sem = args[2 * n_in + 3 + n_in]             # DMA sems, shape (n_in,)

        n = pl.program_id(0)
        th = pl.program_id(1)
        row0 = th * TH

        # ---- stage a (TH + 2)-row halo block of every input into VMEM ------
        copies = []
        for i in range(n_in):
            cp = pltpu.make_async_copy(
                x_hbm[i].at[n, pl.ds(row0, TH), :, :],
                bufs[i].at[pl.ds(1, TH), :, :],
                sem.at[i])
            cp.start()
            copies.append(cp)

        @pl.when(th > 0)                            # top halo row from HBM
        def _():
            for i in range(n_in):
                pltpu.sync_copy(x_hbm[i].at[n, pl.ds(row0 - 1, 1), :, :],
                                bufs[i].at[pl.ds(0, 1), :, :])

        @pl.when(th == 0)                           # image top border -> zeros
        def _():
            for i in range(n_in):
                bufs[i][0:1, :, :] = jnp.zeros((1, W, cins[i]), buf_dtype)

        @pl.when(th < n_h - 1)                      # bottom halo row from HBM
        def _():
            for i in range(n_in):
                pltpu.sync_copy(x_hbm[i].at[n, pl.ds(row0 + TH, 1), :, :],
                                bufs[i].at[pl.ds(TH + 1, 1), :, :])

        @pl.when(th == n_h - 1)                     # image bottom border -> zeros
        def _():
            for i in range(n_in):
                bufs[i][TH + 1:TH + 2, :, :] = jnp.zeros((1, W, cins[i]),
                                                         buf_dtype)

        for cp in copies:
            cp.wait()

        # ---- im2col + single K = 9*Cin MXU matmul per input ----------------
        cout = o_ref.shape[-1]
        acc = jnp.zeros((TH * W, cout), jnp.float32)
        for i in range(n_in):
            c = cins[i]
            x = bufs[i][...]                                     # (TH+2, W, C)
            col = jax.lax.broadcasted_iota(jnp.int32, (TH + 2, W, c), 1)
            # dx shifts along W via XLU roll + boundary masks (padding=1).
            left = jnp.where(col >= 1, pltpu.roll(x, 1, axis=1),
                             jnp.zeros_like(x))                  # dx = 0 tap
            right = jnp.where(col <= W - 2, pltpu.roll(x, W - 1, axis=1),
                              jnp.zeros_like(x))                 # dx = 2 tap
            xw = jnp.concatenate([left, x, right], axis=-1)      # (TH+2, W, 3C)
            # dy shifts are free slices along the untiled leading axis.
            p = jnp.concatenate([xw[0:TH], xw[1:TH + 1], xw[2:TH + 2]],
                                axis=-1)                         # (TH, W, 9C)
            p2 = p.reshape(TH * W, 9 * c).astype(compute_dtype)
            acc = acc + jnp.dot(p2, w_refs[i][...].astype(compute_dtype),
                                preferred_element_type=jnp.float32)

        y = acc * scale_ref[...] + bias_ref[...]     # BatchNorm (inference, folded)
        y = jnp.maximum(y, 0.0)                      # ReLU
        o_ref[...] = y.reshape(TH, W, cout).astype(o_ref.dtype)

    return kernel


def conv_bn_relu(xs, ws, scale, bias, *, tile_h=8, compute_dtype=jnp.float32):
    """Conv3x3(pad=1)+BN+ReLU over the channel concatenation of the inputs in
    `xs` (the conv weight is pre-split per input in `ws`, shape (9*Cin_i, Cout))."""
    N, H, W, _ = xs[0].shape
    for x in xs[1:]:
        assert x.shape[:3] == (N, H, W)
    cins = [int(x.shape[-1]) for x in xs]
    cout = int(ws[0].shape[-1])
    n_in = len(xs)
    TH = tile_h if H % tile_h == 0 else H
    n_h = H // TH

    kernel = _make_conv_kernel(n_in, TH, W, n_h, cins, xs[0].dtype, compute_dtype)

    in_specs = ([pl.BlockSpec(memory_space=pl.ANY)] * n_in
                + [pl.BlockSpec((9 * c, cout), lambda n, h: (0, 0)) for c in cins]
                + [pl.BlockSpec((1, cout), lambda n, h: (0, 0)),
                   pl.BlockSpec((1, cout), lambda n, h: (0, 0))])
    scratch = ([pltpu.VMEM((TH + 2, W, c), xs[0].dtype) for c in cins]
               + [pltpu.SemaphoreType.DMA((n_in,))])

    return pl.pallas_call(
        kernel,
        out_shape=jax.ShapeDtypeStruct((N, H, W, cout), xs[0].dtype),
        grid=(N, n_h),
        in_specs=in_specs,
        out_specs=pl.BlockSpec((None, TH, W, cout), lambda n, h: (n, h, 0, 0)),
        scratch_shapes=scratch,
        compiler_params=pltpu.CompilerParams(
            dimension_semantics=("parallel", "parallel")),
    )(*xs, *ws, scale, bias)


# ---------------------------------------------------------------------------
# UpBlock: parameters + forward
# ---------------------------------------------------------------------------
def init_up_block_params(key, in_channels, out_channels, nb_conv):
    ch = in_channels // 2
    key, k1, k2 = jax.random.split(key, 3)
    # ConvTranspose2d weight layout (Cin, Cout, kH, kW), bias (Cout,)
    wt = 0.3 * jax.random.normal(k1, (ch, ch, 2, 2), jnp.float32)
    bt = 0.1 * jax.random.normal(k2, (ch,), jnp.float32)
    up = dict(
        wt=wt, bt=bt,
        w_dy=jnp.transpose(wt, (2, 0, 3, 1)).reshape(2, ch, 2 * ch),
        b_dy=jnp.tile(bt, (2, 1, 2)),
    )
    layers = []
    cin = in_channels
    for _ in range(nb_conv):
        cout = out_channels
        key, kw, kb0, kg, kb, km, kv = jax.random.split(key, 7)
        w_oihw = 0.2 * jax.random.normal(kw, (cout, cin, 3, 3), jnp.float32)
        b_conv = 0.1 * jax.random.normal(kb0, (cout,), jnp.float32)
        gamma = 1.0 + 0.1 * jax.random.normal(kg, (cout,), jnp.float32)
        beta = 0.1 * jax.random.normal(kb, (cout,), jnp.float32)
        mean = 0.1 * jax.random.normal(km, (cout,), jnp.float32)
        var = jax.random.uniform(kv, (cout,), jnp.float32, 0.5, 1.5)
        eps = 1e-5
        scale = gamma / jnp.sqrt(var + eps)
        bias = beta + scale * (b_conv - mean)          # conv bias + BN folded
        w_hwio = jnp.transpose(w_oihw, (2, 3, 1, 0))   # (3, 3, Cin, Cout)
        layers.append(dict(w_hwio=w_hwio,
                           scale=scale.reshape(1, cout),
                           bias=bias.reshape(1, cout)))
        cin = cout
    return dict(up=up, convs=layers)


def up_block_forward(x_nchw, skip_nchw, params):
    x = jnp.transpose(x_nchw, (0, 2, 3, 1))            # NCHW -> NHWC
    skip = jnp.transpose(skip_nchw, (0, 2, 3, 1))
    up = conv_transpose_2x2(x, params["up"]["w_dy"], params["up"]["b_dy"])
    ch_up = up.shape[-1]

    convs = params["convs"]
    # First conv: torch.cat([up, skip], dim=1) fused by splitting W along Cin.
    w0 = convs[0]["w_hwio"]
    cout0 = w0.shape[-1]
    assert ch_up + skip.shape[-1] == w0.shape[2]
    w_up = w0[:, :, :ch_up, :].reshape(9 * ch_up, cout0)
    w_sk = w0[:, :, ch_up:, :].reshape(-1, cout0)
    y = conv_bn_relu([up, skip], [w_up, w_sk], convs[0]["scale"], convs[0]["bias"])
    # Remaining ConvBatchNorm layers.
    for p in convs[1:]:
        cin = p["w_hwio"].shape[2]
        y = conv_bn_relu([y], [p["w_hwio"].reshape(9 * cin, -1)],
                         p["scale"], p["bias"])
    return jnp.transpose(y, (0, 3, 1, 2))              # NHWC -> NCHW


# Pure-JAX reference for correctness checking.
def up_block_reference(x_nchw, skip_nchw, params):
    x = jnp.transpose(x_nchw, (0, 2, 3, 1))
    skip = jnp.transpose(skip_nchw, (0, 2, 3, 1))
    wt, bt = params["up"]["wt"], params["up"]["bt"]
    up = jnp.einsum("nijc,coyx->niyjxo", x, wt)
    N, Hi, _, Wi, _, Co = up.shape
    up = up.reshape(N, 2 * Hi, 2 * Wi, Co) + bt
    y = jnp.concatenate([up, skip], axis=-1)
    for p in params["convs"]:
        z = jax.lax.conv_general_dilated(
            y, p["w_hwio"], window_strides=(1, 1), padding="SAME",
            dimension_numbers=("NHWC", "HWIO", "NHWC"))
        z = z * p["scale"].reshape(1, 1, 1, -1) + p["bias"].reshape(1, 1, 1, -1)
        y = jnp.maximum(z, 0.0)
    return jnp.transpose(y, (0, 3, 1, 2))


if __name__ == "__main__":
    key = jax.random.PRNGKey(0)
    kx, ks, kp = jax.random.split(key, 3)
    # UpBlock(in_channels=8, out_channels=16, nb_Conv=2); PyTorch-style NCHW inputs.
    in_channels, out_channels, nb_conv = 8, 16, 2
    N, Hs, Ws = 2, 8, 8                                 # low-res decoder feature
    x = jax.random.normal(kx, (N, in_channels // 2, Hs, Ws), jnp.float32)
    skip = jax.random.normal(ks, (N, in_channels // 2, 2 * Hs, 2 * Ws), jnp.float32)
    params = init_up_block_params(kp, in_channels, out_channels, nb_conv)

    out = jax.block_until_ready(up_block_forward(x, skip, params))
    ref = up_block_reference(x, skip, params)

    assert out.shape == (N, out_channels, 2 * Hs, 2 * Ws), out.shape
    if not jnp.allclose(out, ref, atol=1e-3, rtol=1e-3):
        err = float(jnp.max(jnp.abs(out - ref)))
        raise AssertionError(f"Pallas UpBlock mismatch (max abs err = {err})")
    print("KERNEL_OK")
</pallas_src>

<mosaic_0001>
module attributes {stable_mosaic.version = 11 : i64} {
  func.func @_conv_transpose_2x2_kernel(%arg0: i32, %arg1: i32, %arg2: memref<1x8x8x4xf32, #tpu.memory_space<vmem>>, %arg3: memref<2x4x8xf32, #tpu.memory_space<vmem>>, %arg4: memref<2x1x8xf32, #tpu.memory_space<vmem>>, %arg5: memref<1x8x2x8x8xf32, #tpu.memory_space<vmem>>) attributes {dimension_semantics = [#tpu.dimension_semantics<parallel>, #tpu.dimension_semantics<parallel>], iteration_bounds = array<i64: 2, 1>, scalar_prefetch = 0 : i64, scratch_operands = 0 : i64, tpu.core_type = #tpu.core_type<tc>, window_params = [{transform_indices = @transform_0, window_bounds = array<i64: 1, 8, 8, 4>}, {pipeline_mode = #tpu.pipeline_mode<synchronous>, transform_indices = @transform_1, window_bounds = array<i64: 2, 4, 8>}, {pipeline_mode = #tpu.pipeline_mode<synchronous>, transform_indices = @transform_2, window_bounds = array<i64: 2, 1, 8>}, {transform_indices = @transform_3, window_bounds = array<i64: 1, 8, 2, 8, 8>}]} {
    %c0 = arith.constant 0 : index
    %c0_0 = arith.constant 0 : index
    %c0_1 = arith.constant 0 : index
    %c0_2 = arith.constant 0 : index
    %0 = vector.load %arg2[%c0, %c0_0, %c0_1, %c0_2] : memref<1x8x8x4xf32, #tpu.memory_space<vmem>>, vector<1x8x8x4xf32>
    %1 = vector.shape_cast %0 : vector<1x8x8x4xf32> to vector<8x8x4xf32>
    %2 = vector.shape_cast %1 : vector<8x8x4xf32> to vector<64x4xf32>
    %c0_3 = arith.constant 0 : index
    %c0_4 = arith.constant 0 : index
    %c0_5 = arith.constant 0 : index
    %3 = vector.load %arg3[%c0_3, %c0_4, %c0_5] : memref<2x4x8xf32, #tpu.memory_space<vmem>>, vector<1x4x8xf32>
    %4 = vector.shape_cast %3 : vector<1x4x8xf32> to vector<4x8xf32>
    %cst = arith.constant dense<0.000000e+00> : vector<64x8xf32>
    %5 = tpu.matmul %2, %4, %cst {dimension_numbers = #tpu.dot_dimension_numbers<[1], [0], [0], [1], [0, 0, 1, 1], [], []>} : vector<64x4xf32>, vector<4x8xf32>, vector<64x8xf32> -> vector<64x8xf32>
    %c0_6 = arith.constant 0 : index
    %c0_7 = arith.constant 0 : index
    %c0_8 = arith.constant 0 : index
    %6 = vector.load %arg4[%c0_6, %c0_7, %c0_8] : memref<2x1x8xf32, #tpu.memory_space<vmem>>, vector<1x1x8xf32>
    %7 = vector.shape_cast %6 : vector<1x1x8xf32> to vector<1x8xf32>
    %8 = vector.broadcast %7 : vector<1x8xf32> to vector<64x8xf32>
    %9 = arith.addf %5, %8 : vector<64x8xf32>
    %c1 = arith.constant 1 : index
    %c0_9 = arith.constant 0 : index
    %c0_10 = arith.constant 0 : index
    %10 = vector.load %arg3[%c1, %c0_9, %c0_10] : memref<2x4x8xf32, #tpu.memory_space<vmem>>, vector<1x4x8xf32>
    %11 = vector.shape_cast %10 : vector<1x4x8xf32> to vector<4x8xf32>
    %cst_11 = arith.constant dense<0.000000e+00> : vector<64x8xf32>
    %12 = tpu.matmul %2, %11, %cst_11 {dimension_numbers = #tpu.dot_dimension_numbers<[1], [0], [0], [1], [0, 0, 1, 1], [], []>} : vector<64x4xf32>, vector<4x8xf32>, vector<64x8xf32> -> vector<64x8xf32>
    %c1_12 = arith.constant 1 : index
    %c0_13 = arith.constant 0 : index
    %c0_14 = arith.constant 0 : index
    %13 = vector.load %arg4[%c1_12, %c0_13, %c0_14] : memref<2x1x8xf32, #tpu.memory_space<vmem>>, vector<1x1x8xf32>
    %14 = vector.shape_cast %13 : vector<1x1x8xf32> to vector<1x8xf32>
    %15 = vector.broadcast %14 : vector<1x8xf32> to vector<64x8xf32>
    %16 = arith.addf %12, %15 : vector<64x8xf32>
    %17 = vector.shape_cast %9 : vector<64x8xf32> to vector<8x1x8x8xf32>
    %c0_15 = arith.constant 0 : index
    %c0_16 = arith.constant 0 : index
    %c0_17 = arith.constant 0 : index
    %c0_18 = arith.constant 0 : index
    %c0_19 = arith.constant 0 : index
    %18 = vector.load %arg5[%c0_15, %c0_16, %c0_17, %c0_18, %c0_19] : memref<1x8x2x8x8xf32, #tpu.memory_space<vmem>>, vector<1x8x1x8x8xf32>
    %19 = vector.shape_cast %18 : vector<1x8x1x8x8xf32> to vector<8x1x8x8xf32>
    %20 = vector.shape_cast %17 : vector<8x1x8x8xf32> to vector<1x8x1x8x8xf32>
    tpu.vector_store %arg5[%c0_15, %c0_16, %c0_17, %c0_18, %c0_19], %20 {strides = array<i32>} : memref<1x8x2x8x8xf32, #tpu.memory_space<vmem>>, vector<1x8x1x8x8xf32>,
    %21 = vector.shape_cast %16 : vector<64x8xf32> to vector<8x1x8x8xf32>
    %c0_20 = arith.constant 0 : index
    %c0_21 = arith.constant 0 : index
    %c1_22 = arith.constant 1 : index
    %c0_23 = arith.constant 0 : index
    %c0_24 = arith.constant 0 : index
    %22 = vector.load %arg5[%c0_20, %c0_21, %c1_22, %c0_23, %c0_24] : memref<1x8x2x8x8xf32, #tpu.memory_space<vmem>>, vector<1x8x1x8x8xf32>
    %23 = vector.shape_cast %22 : vector<1x8x1x8x8xf32> to vector<8x1x8x8xf32>
    %24 = vector.shape_cast %21 : vector<8x1x8x8xf32> to vector<1x8x1x8x8xf32>
    tpu.vector_store %arg5[%c0_20, %c0_21, %c1_22, %c0_23, %c0_24], %24 {strides = array<i32>} : memref<1x8x2x8x8xf32, #tpu.memory_space<vmem>>, vector<1x8x1x8x8xf32>,
    return
  }
  func.func @transform_0(%arg0: i32, %arg1: i32) -> (i32, i32, i32, i32) {
    %c0_i32 = arith.constant 0 : i32
    %c0_i32_0 = arith.constant 0 : i32
    %c0_i32_1 = arith.constant 0 : i32
    return %arg0, %arg1, %c0_i32, %c0_i32_0 : i32, i32, i32, i32
  }
  func.func @transform_1(%arg0: i32, %arg1: i32) -> (i32, i32, i32) {
    %c0_i32 = arith.constant 0 : i32
    %c0_i32_0 = arith.constant 0 : i32
    %c0_i32_1 = arith.constant 0 : i32
    %c0_i32_2 = arith.constant 0 : i32
    return %c0_i32, %c0_i32_0, %c0_i32_1 : i32, i32, i32
  }
  func.func @transform_2(%arg0: i32, %arg1: i32) -> (i32, i32, i32) {
    %c0_i32 = arith.constant 0 : i32
    %c0_i32_0 = arith.constant 0 : i32
    %c0_i32_1 = arith.constant 0 : i32
    %c0_i32_2 = arith.constant 0 : i32
    return %c0_i32, %c0_i32_0, %c0_i32_1 : i32, i32, i32
  }
  func.func @transform_3(%arg0: i32, %arg1: i32) -> (i32, i32, i32, i32, i32) {
    %c0_i32 = arith.constant 0 : i32
    %c0_i32_0 = arith.constant 0 : i32
    %c0_i32_1 = arith.constant 0 : i32
    %c0_i32_2 = arith.constant 0 : i32
    return %arg0, %arg1, %c0_i32, %c0_i32_0, %c0_i32_1 : i32, i32, i32, i32, i32
  }
}

</mosaic_0001>

<bundles_post_ra>
// kernel: tpu_custom_call.1
= control target key start
LH: loop header
LB: loop body
LE: loop exit
PB: predicated region body
PF: predicated region fallthrough
CT: control target
= control target key end

     0   :  { %8 = vsyncpa [#allocation3], 0  ;;  %s820_s0 = inlined_call_operand.vmem [shape: f32[2,8,8,4], index: 0, kind: input, shape index: {}]   ;;  %s821_s1 = inlined_call_operand.vmem [shape: f32[2,4,8], index: 1, kind: input, shape index: {}]   ;;  %s822_s2 = inlined_call_operand.vmem [shape: f32[2,1,8], index: 2, kind: input, shape index: {}]   ;;  %s823_s3 = inlined_call_operand.hbm [shape: f32[2,8,2,8,8], index: 3, kind: output, shape index: {}]  }
   0x1   :  { %10 = vsyncpa [#allocation3 + $0x1], 0  ;;  %s656_s12 = smov 0   ;;  %s658_s13 = smov 0  }
   0x2   :  { %s660_s14 = smov 0   ;;  %s662_s15 = smov 0  }
   0x3   :  { %s664_s16 = smov 0   ;;  %s666_s17 = smov 0  }
   0x4 LB: > { %s450_s18 = sadd.s32 4294967295, %s632_s17   ;;  %s451_s19 = sadd.s32 4294967294, %s632_s17   ;;  %s632_s17 = sphi %s666_s17, %s16_s17   ;;  %s628_s16 = sphi %s664_s16, %s830_s16   ;;  %s624_s15 = sphi %s662_s15, %s829_s15   ;;  %s620_s14 = sphi %s660_s14, %s828_s14   ;;  %s616_s13 = sphi %s658_s13, %s827_s13   ;;  %s612_s12 = sphi %s656_s12, %s826_s12  }
   0x5   : > { %s28_s20 = sadd.s32 1, %s628_s16  ;;  %s107_s21 = sadd.s32 1, %s620_s14 }
   0x6   : > { %p30_p0 = scmp.ge.s32.totalorder %s28_s20, 2  ;;  %p117_p1 = scmp.ne.s32.totalorder %s620_s14, %s616_s13 }
   0x7   : > { %p118_p2 = scmp.eq.s32.totalorder %s450_s18, 1  ;;  %p123_p3 = scmp.ne.s32.totalorder %s616_s13, %s612_s12 }
   0x8   : > { %s832_s20 = smov (%p30_p0, %s28_s20), 0  ;;  %p124_p5 = scmp.eq.s32.totalorder %s451_s19, 1 }
   0x9   : > { %p696_p4 = por %p118_p2, %p117_p1  ;;  %s102_s23 = ssub.s32 %s628_s16, %s832_s20 }
   0xa   : > { %p454_p6 = scmp.ge.s32.totalorder %s632_s17, 1  ;;  %p105_p7 = scmp.eq.s32.totalorder %s102_s23, 0 }
   0xb   : > { %p703_p8 = por %p124_p5, %p123_p3  ;;  %p161_p9 = scmp.lt.s32.totalorder %s632_s17, 3 }
   0xc   : > { %s709_s25 = scalar_select %p105_p7, %s620_s14, %s107_s21  }
   0xd   : > { %p162_p10 = pnand %p454_p6, %p161_p9 }
   0xe   : > { %p190_p11 = scmp.lt.s32.totalorder (!%p162_p10), %s624_s15, 1  ;;  %s186_s8 = sand.u32 (!%p162_p10), 1, %s616_s13  }
   0xf   : > { %165 = sbr.rel (%p162_p10) target bundleno = 188 (0xbc), region = 32  ;;  %s455_s9 = sshll.u32 (!%p162_p10), %s186_s8, 7 }
  0x10   : > { %s747_s21 = scalar_lea.vmem (!%p162_p10), [#allocation2], %s455_s9  ;;  %s492_s23 = sshll.u32 (!%p162_p10), %s624_s15, 7 }
  0x11   : > { %s367_s28 = scalar_lea.hbm (!%p162_p10), %s823_s3, %s492_s23  ;;  %s574_s9 = scalar_lea.hbm (!%p162_p10), %s823_s3, 256 }
  0x12   : > { %s370_s29 = sshll.u32 (!%p162_p10), %s367_s28, 4  ;;  %s371_s29 = int_to_ptr.hbm [resolvable:$true] %s370_s29 }
  0x14   : > { %v208_v0 = vld [vmem:[%s821_s1] sm:$0xf]  ;;  %vm238_vm0 = vcmask 1043456   ;;  %v467_v1 = vld [vmem:[%s821_s1 + $0x4] sm:$0xf]  ;;  %s191_s30 = scalar_select %p190_p11, %s624_s15, 1 }
  0x15   : > { %493 = vmatpush.msk.msra.mxu2 %vm238_vm0, %v208_v0  ;;  %494 = vmatpush.msk.msra.mxu3 %vm238_vm0, %v467_v1  ;;  %vm213_vm1 = vcmask 31744   ;;  %v552_v10 = vld [vmem:[%s822_s2] ss:$0 sm:$0xff]  ;;  %v553_v11 = vld [vmem:[%s822_s2 + $0x1] ss:$0 sm:$0xff]  ;;  %vm334_vm2 = vcmask 64512  }
  0x16   : > { %458 = vmatpush.msk.msra.mxu0 %vm238_vm0, %v208_v0  ;;  %469 = vmatpush.msk.msra.mxu1 %vm238_vm0, %v467_v1  ;;  %s491_s4 = sshll.u32 %s191_s30, 6  ;;  %s368_s15 = sshll.u32 %s747_s21, 4  ;;  %s369_s15 = int_to_ptr.vmem [resolvable:$true] %s368_s15 }
  0x17   : > { %s197_s7 = scalar_lea.vmem %s820_s0, %s491_s4  ;;  %s353_s30 = scalar_lea.sflag [#allocation3], %s186_s8 }
  0x18   : > { %v204_v2 = vld [vmem:[%s197_s7 + $0x20] sm:$0xff]  ;;  %v205_v4 = vld [vmem:[%s197_s7 + $0x28] sm:$0xff]  ;;  %v206_v6 = vld [vmem:[%s197_s7 + $0x30] sm:$0xff]  ;;  %s568_s4 = sshra.s32 %s371_s29, 4  ;;  %s569_s4 = int_to_ptr.hbm [resolvable:$true] %s568_s4 }
  0x19   : > { %v200_v3 = vld [vmem:[%s197_s7] sm:$0xff]  ;;  %463 = vmatmul.msk.f32.vlgmr.msra.gmra.mxu2 %vm213_vm1, %v204_v2  ;;  %474 = vmatmul.msk.f32.vlgmr.msra.gmra.mxu3 %vm213_vm1, %v204_v2  ;;  %v201_v5 = vld [vmem:[%s197_s7 + $0x8] sm:$0xff]  ;;  %v202_v7 = vld [vmem:[%s197_s7 + $0x10] sm:$0xff]  ;;  %s570_s5 = scalar_lea.hbm %s569_s4, 128  ;;  %p575_p1 = scmp.lt.s32.totalorder %s569_s4, %s823_s3 }
  0x1a   : > { %459 = vmatmul.msk.f32.vlgmr.msra.gmra.mxu0 %vm213_vm1, %v200_v3  ;;  %470 = vmatmul.msk.f32.vlgmr.msra.gmra.mxu1 %vm213_vm1, %v200_v3  ;;  %v207_v8 = vld [vmem:[%s197_s7 + $0x38] sm:$0xff]  ;;  %p571_p12 = scmp.ne.s32.totalorder %s569_s4, %s570_s5  ;;  %p576_p2 = scmp.lt.s32.totalorder %s574_s9, %s570_s5 }
  0x1b   : > { %v203_v9 = vld [vmem:[%s197_s7 + $0x18] sm:$0xff] }
  0x1c   : > { %p572_p13 = pnand %p571_p12, %p696_p4  ;;  %p577_p3 = por %p576_p2, %p575_p1 }
  0x1e   : > { %p573_p0 = pneg %p572_p13 }
  0x20   : > { %p578_p5 = pnand %p577_p3, %p573_p0 }
  0x21   : > { %464 = vmatmul.msk.f32.gmra.mxu2 %vm213_vm1, %v205_v4  ;;  %475 = vmatmul.msk.f32.gmra.mxu3 %vm213_vm1, %v205_v4 }
  0x22   : > { %460 = vmatmul.msk.f32.gmra.mxu0 %vm213_vm1, %v201_v5  ;;  %471 = vmatmul.msk.f32.gmra.mxu1 %vm213_vm1, %v201_v5 }
  0x29   : > { %465 = vmatmul.msk.f32.gmra.mxu2 %vm213_vm1, %v206_v6  ;;  %476 = vmatmul.msk.f32.gmra.mxu3 %vm213_vm1, %v206_v6 }
  0x2a   : > { %461 = vmatmul.msk.f32.gmra.mxu0 %vm213_vm1, %v202_v7  ;;  %472 = vmatmul.msk.f32.gmra.mxu1 %vm213_vm1, %v202_v7 }
  0x31   : > { %466 = vmatmul.msk.f32.gmra.mxu2 %vm213_vm1, %v207_v8  ;;  %477 = vmatmul.msk.f32.gmra.mxu3 %vm213_vm1, %v207_v8 }
  0x32   : > { %462 = vmatmul.msk.f32.gmra.mxu0 %vm213_vm1, %v203_v9  ;;  %473 = vmatmul.msk.f32.gmra.mxu1 %vm213_vm1, %v203_v9 }
  0x97   : > { %v259_v12 = vpop.f32.mrf.mxu0  ;;  %v310_v13 = vpop.f32.mrf.mxu1 }
  0x98   : > { %v260_v14 = vadd.f32 %v552_v10, %v259_v12  ;;  %v311_v15 = vadd.f32 %v553_v11, %v310_v13 }
  0x9a   : > { %335 = vst.msk [vmem:[%s747_s21] sm:$0xff] %vm334_vm2, %v260_v14 }
  0x9b   : > { %478 = vst.msk [vmem:[%s747_s21 + $0x8] sm:$0xff] %vm334_vm2, %v311_v15 }
  0x9c   : > { %v271_v16 = vpop.f32.mrf.mxu2  ;;  %v322_v17 = vpop.f32.mrf.mxu3 }
  0x9d   : > { %v272_v18 = vadd.f32 %v552_v10, %v271_v16  ;;  %v323_v19 = vadd.f32 %v553_v11, %v322_v17 }
  0x9f   : > { %339 = vst.msk [vmem:[%s747_s21 + $0x40] sm:$0xff] %vm334_vm2, %v272_v18  ;;  %v262_v20 = vpop.f32.mrf.mxu0  ;;  %v313_v21 = vpop.f32.mrf.mxu1 }
  0xa0   : > { %482 = vst.msk [vmem:[%s747_s21 + $0x48] sm:$0xff] %vm334_vm2, %v323_v19  ;;  %v263_v22 = vadd.f32 %v552_v10, %v262_v20  ;;  %v314_v23 = vadd.f32 %v553_v11, %v313_v21 }
  0xa2   : > { %336 = vst.msk [vmem:[%s747_s21 + $0x10] sm:$0xff] %vm334_vm2, %v263_v22 }
  0xa3   : > { %479 = vst.msk [vmem:[%s747_s21 + $0x18] sm:$0xff] %vm334_vm2, %v314_v23 }
  0xa4   : > { %v274_v24 = vpop.f32.mrf.mxu2  ;;  %v325_v25 = vpop.f32.mrf.mxu3 }
  0xa5   : > { %v275_v26 = vadd.f32 %v552_v10, %v274_v24  ;;  %v326_v27 = vadd.f32 %v553_v11, %v325_v25 }
  0xa7   : > { %340 = vst.msk [vmem:[%s747_s21 + $0x50] sm:$0xff] %vm334_vm2, %v275_v26  ;;  %v265_v28 = vpop.f32.mrf.mxu0  ;;  %v316_v29 = vpop.f32.mrf.mxu1 }
  0xa8   : > { %483 = vst.msk [vmem:[%s747_s21 + $0x58] sm:$0xff] %vm334_vm2, %v326_v27  ;;  %v266_v30 = vadd.f32 %v552_v10, %v265_v28  ;;  %v317_v31 = vadd.f32 %v553_v11, %v316_v29 }
  0xaa   : > { %337 = vst.msk [vmem:[%s747_s21 + $0x20] sm:$0xff] %vm334_vm2, %v266_v30 }
  0xab   : > { %480 = vst.msk [vmem:[%s747_s21 + $0x28] sm:$0xff] %vm334_vm2, %v317_v31 }
  0xac   : > { %v277_v32 = vpop.f32.mrf.mxu2  ;;  %v328_v33 = vpop.f32.mrf.mxu3 }
  0xad   : > { %v278_v34 = vadd.f32 %v552_v10, %v277_v32  ;;  %v329_v35 = vadd.f32 %v553_v11, %v328_v33 }
  0xaf   : > { %341 = vst.msk [vmem:[%s747_s21 + $0x60] sm:$0xff] %vm334_vm2, %v278_v34  ;;  %v268_v36 = vpop.f32.mrf.mxu0  ;;  %v319_v37 = vpop.f32.mrf.mxu1 }
  0xb0   : > { %484 = vst.msk [vmem:[%s747_s21 + $0x68] sm:$0xff] %vm334_vm2, %v329_v35  ;;  %v269_v38 = vadd.f32 %v552_v10, %v268_v36  ;;  %v320_v39 = vadd.f32 %v553_v11, %v319_v37 }
  0xb2   : > { %338 = vst.msk [vmem:[%s747_s21 + $0x30] sm:$0xff] %vm334_vm2, %v269_v38 }
  0xb3   : > { %481 = vst.msk [vmem:[%s747_s21 + $0x38] sm:$0xff] %vm334_vm2, %v320_v39 }
  0xb4   : > { %v280_v40 = vpop.f32.mrf.mxu2  ;;  %v331_v41 = vpop.f32.mrf.mxu3 }
  0xb5   : > { %v281_v42 = vadd.f32 %v552_v10, %v280_v40  ;;  %v332_v43 = vadd.f32 %v553_v11, %v331_v41 }
  0xb7   : > { %342 = vst.msk [vmem:[%s747_s21 + $0x70] sm:$0xff] %vm334_vm2, %v281_v42 }
  0xb8   : > { %485 = vst.msk [vmem:[%s747_s21 + $0x78] sm:$0xff] %vm334_vm2, %v332_v43 }
  0xb9   : > { %581 = shalt.err (!%p578_p5)
}
  0xba   : > { %s634_s8 = smov 128   ;;  %s635_s18 = smov 8  }
  0xbb   : > { %495 = dma.vmem_to_hbm [thread:$0]  (%p696_p4), %s369_s15, 2048, %s371_s29, %s353_s30, %s634_s8, %s634_s8, %s635_s18  }
  0xbc PF: > { %p501_p6 = scmp.ge.s32.totalorder %s632_s17, 2  ;;  %s385_s19 = sand.u32 1, %s612_s12  }
  0xbd   : > { %s386_s21 = scalar_lea.sflag [#allocation3], %s385_s19 }
  0xbe   : > { %p498_p7 = pnand %p501_p6, %p703_p8 }
  0xc0   : > { %p499_p9 = pneg %p498_p7 }
  0xc2   : > { %607 = dma.done.wait (%p499_p9), %s386_s21, 2048  }
  0xc3   : > { %609 = vsyncadd (%p499_p9), %s386_s21, 4294965248  ;;  %s16_s17 = sadd.s32 1, %s632_s17   ;;  %s826_s12 = smov %s616_s13 }
  0xc4   : > { %p13_p10 = scmp.ge.s32.totalorder %s16_s17, 4   ;;  %s827_s13 = smov %s620_s14 }
  0xc5   : > { %s828_s14 = smov %s709_s25  ;;  %s829_s15 = smov %s628_s16 }
  0xc6   : > { %s830_s16 = smov %s832_s20  ;;  %15 = sbr.rel (!%p13_p10) target bundleno = 4 (0x4), region = 70 }
  0xcb   :  { %392 = vsyncpa [#allocation3], 1 }
  0xcc   :  { %394 = vsyncpa [#allocation3 + $0x1], 1 }

</bundles_post_ra>
